<compile_context>
chip_gen: v7x
topology: tpu7x:2x2x1
jax: 0.10.0
libtpu: 0.0.40
codegen_flags: <defaults>
</compile_context>

<pallas_src>
import functools

import jax
import jax.numpy as jnp
from jax.experimental import pallas as pl
from jax.experimental.pallas import tpu as pltpu


def _round_up(x, m):
    return ((x + m - 1) // m) * m


def _cdiv(a, b):
    return (a + b - 1) // b


def _tile_sum(v):
    # (C, T) -> (1, 1): accumulate the T/128 lane-vregs elementwise (VPU), one
    # cross-lane tree reduce, then one cross-sublane reduce (cheap XLU).
    lane = jnp.sum(v, axis=1, keepdims=True)      # (C, 1)
    return jnp.sum(lane, axis=0, keepdims=True)   # (1, 1)


def _nfl_kernel(n_ref, logits_ref, target_ref, out_ref, *, gamma, scale,
                approx, block_cols):
    x = logits_ref[...].astype(jnp.float32)        # (C, T)  cast in VMEM (free)
    t = target_ref[...]                            # (1, T)  int32

    # numerically-stable log_softmax over the class (sublane) axis
    m = jnp.max(x, axis=0, keepdims=True)          # (1, T)
    z = x - m                                      # (C, T)
    e = jnp.exp(z)                                 # (C, T)  one EUP pass
    s = jnp.sum(e, axis=0, keepdims=True)          # (1, T)
    inv_s = pl.reciprocal(s, approx=approx)        # (1, T)  EUP
    logpt = z - jnp.log(s)                         # (C, T)
    pt = e * inv_s                                 # softmax probs (reuses exp)

    # per-class focal term: -(1 - pt)^gamma * logpt   (logpt <= 0 so focal >= 0)
    # clamp 1-pt at 0: approx reciprocal may push pt a hair above 1.
    one_minus_pt = jnp.maximum(1.0 - pt, 0.0)
    if gamma == 0.5:
        w = jnp.sqrt(one_minus_pt)                 # one EUP op instead of pow
    else:
        w = one_minus_pt ** gamma
    focal = -w * logpt                             # (C, T)

    normalizor = jnp.sum(focal, axis=0, keepdims=True)                 # (1, T)
    scaled = scale * pl.reciprocal(normalizor, approx=approx)          # (1, T)

    # target-class pick via one-hot select; NO extra sublane reduction here --
    # the class+lane sum is folded into the single per-tile reduction below.
    row = jax.lax.broadcasted_iota(jnp.int32, focal.shape, 0)          # (C, T)
    contrib = jnp.where(row == t, focal * scaled, 0.0)                 # (C, T)

    i = pl.program_id(0)
    is_last = i == pl.num_programs(0) - 1

    @pl.when(jnp.logical_not(is_last))
    def _():
        # interior tiles are fully valid: no masking work at all
        out_ref[...] = jnp.broadcast_to(_tile_sum(contrib), out_ref.shape)

    @pl.when(is_last)
    def _():
        # boundary block: tail columns hold unspecified data; kill them with a
        # select BEFORE the sum so NaN/Inf garbage never reaches the reduction.
        col = jax.lax.broadcasted_iota(jnp.int32, (1, contrib.shape[1]), 1)
        valid = (col + i * block_cols) < n_ref[0]                      # (1, T)
        masked = jnp.where(valid, contrib, 0.0)                        # (C, T)
        out_ref[...] = jnp.broadcast_to(_tile_sum(masked), out_ref.shape)


def normalized_focal_loss(logits, target, *, gamma=0.5, scale=1.0,
                          tile_n=32768, approx_recip=True, class_major=False):
    """logits: (N, C) float (f32/bf16) or (C, N) if class_major=True;
    target: (N,) int. Returns the scalar mean NormalizedFocalLoss."""
    if class_major:
        C, N = logits.shape
        logits_cn = logits
    else:
        N, C = logits.shape
        # One extra HBM pass; see TODO(synk) at top of file.
        logits_cn = jnp.transpose(logits)          # (C, N), native dtype

    # Tile selection: big lane-dense tiles (amortize ~0.35us/step), but keep
    # >= ~8 grid steps for mid/large N so both v7x TensorCores get work, and
    # cap at tile_n columns (VMEM: ~<=10 MiB/step at 32768, fits all chips).
    n_cols = _round_up(max(N, 1), 128)
    tile = min(tile_n, max(4096, _round_up(_cdiv(N, 8), 128)))
    tile = max(128, min(_round_up(tile, 128), n_cols))
    num_tiles = _cdiv(N, tile)

    target2d = target.astype(jnp.int32).reshape(1, N)    # no padding
    n_valid = jnp.asarray([N], dtype=jnp.int32)          # prefetched SMEM scalar

    kernel = functools.partial(_nfl_kernel, gamma=gamma, scale=scale,
                               approx=approx_recip, block_cols=tile)

    partials = pl.pallas_call(
        kernel,
        out_shape=jax.ShapeDtypeStruct((1, num_tiles * 128), jnp.float32),
        grid_spec=pltpu.PrefetchScalarGridSpec(
            num_scalar_prefetch=1,
            grid=(num_tiles,),
            in_specs=[
                pl.BlockSpec((C, tile), lambda i, n: (0, i)),
                pl.BlockSpec((1, tile), lambda i, n: (0, i)),
            ],
            out_specs=pl.BlockSpec((1, 128), lambda i, n: (0, i)),
        ),
        compiler_params=pltpu.CompilerParams(
            dimension_semantics=("parallel",)),
    )(n_valid, logits_cn, target2d)

    # Each (1,128) output block is its tile's partial sum replicated across all
    # 128 lanes, so a contiguous full sum / 128 recovers the total (exact: /2^7).
    return jnp.sum(partials) * (1.0 / 128.0) / jnp.float32(N)


def _reference_jax(logits, target, gamma=0.5, scale=1.0):
    logpt = jax.nn.log_softmax(logits.astype(jnp.float32), axis=1)
    normalizor = jnp.sum(-(1.0 - jnp.exp(logpt)) ** gamma * logpt, axis=1)
    logpt_t = jnp.take_along_axis(logpt, target.reshape(-1, 1), axis=1).reshape(-1)
    pt = jnp.exp(logpt_t)
    loss = -(1.0 - pt) ** gamma * logpt_t
    loss = scale * loss / normalizor
    return jnp.mean(loss)


if __name__ == "__main__":
    # Module defaults: gamma=0.5, num_classes=6, scale=1.0.
    # N deliberately NOT a multiple of 128 to exercise the boundary-block mask.
    N, C = 200, 6
    key = jax.random.PRNGKey(0)
    k1, k2 = jax.random.split(key)
    logits = jax.random.normal(k1, (N, C), dtype=jnp.float32)
    target = jax.random.randint(k2, (N,), 0, C, dtype=jnp.int32)

    ref = _reference_jax(logits, target, gamma=0.5, scale=1.0)

    # exact-reciprocal path, forced multi-tile (interior + boundary blocks): tight f32 check
    out_exact = jax.block_until_ready(
        normalized_focal_loss(logits, target, approx_recip=False, tile_n=128))
    assert jnp.allclose(out_exact, ref, rtol=1e-5, atol=1e-5), (out_exact, ref)

    # default path (approx EUP reciprocal, auto tile -> single boundary tile here)
    out_def = jax.block_until_ready(normalized_focal_loss(logits, target))
    assert jnp.allclose(out_def, ref, rtol=2e-3, atol=2e-3), (out_def, ref)

    # bf16 logits pass-through (half the logits DMA bytes; math is still f32 in-kernel)
    logits_bf16 = logits.astype(jnp.bfloat16)
    ref_bf = _reference_jax(logits_bf16, target)
    out_bf = jax.block_until_ready(
        normalized_focal_loss(logits_bf16, target, tile_n=128))
    assert jnp.allclose(out_bf, ref_bf, rtol=2e-3, atol=2e-3), (out_bf, ref_bf)

    print("KERNEL_OK")
</pallas_src>

<mosaic_0001>
module attributes {stable_mosaic.version = 11 : i64} {
  func.func @_nfl_kernel(%arg0: i32, %arg1: memref<1xi32, #tpu.memory_space<smem>>, %arg2: memref<6x128xf32, #tpu.memory_space<vmem>>, %arg3: memref<1x128xi32, #tpu.memory_space<vmem>>, %arg4: memref<1x128xf32, #tpu.memory_space<vmem>>) attributes {dimension_semantics = [#tpu.dimension_semantics<parallel>], iteration_bounds = array<i64: 2>, scalar_prefetch = 1 : i64, scratch_operands = 0 : i64, tpu.core_type = #tpu.core_type<tc>, window_params = [{transform_indices = @transform_0, window_bounds = array<i64: 6, 128>}, {transform_indices = @transform_1, window_bounds = array<i64: 1, 128>}, {transform_indices = @transform_2, window_bounds = array<i64: 1, 128>}]} {
    %c0 = arith.constant 0 : index
    %c0_0 = arith.constant 0 : index
    %0 = vector.load %arg2[%c0, %c0_0] : memref<6x128xf32, #tpu.memory_space<vmem>>, vector<6x128xf32>
    %c0_1 = arith.constant 0 : index
    %c0_2 = arith.constant 0 : index
    %1 = vector.load %arg3[%c0_1, %c0_2] : memref<1x128xi32, #tpu.memory_space<vmem>>, vector<1x128xi32>
    %cst = arith.constant dense<0xFF800000> : vector<128xf32>
    %2 = vector.multi_reduction <maximumf>, %0, %cst [0] : vector<6x128xf32> to vector<128xf32>
    %3 = vector.shape_cast %2 : vector<128xf32> to vector<1x128xf32>
    %4 = vector.broadcast %3 : vector<1x128xf32> to vector<6x128xf32>
    %5 = arith.subf %0, %4 : vector<6x128xf32>
    %6 = math.exp %5 : vector<6x128xf32>
    %cst_3 = arith.constant dense<0.000000e+00> : vector<128xf32>
    %7 = vector.multi_reduction <add>, %6, %cst_3 [0] : vector<6x128xf32> to vector<128xf32>
    %8 = vector.shape_cast %7 : vector<128xf32> to vector<1x128xf32>
    %9 = tpu.reciprocal %8 : vector<1x128xf32> -> vector<1x128xf32>
    %10 = math.log %8 : vector<1x128xf32>
    %11 = vector.broadcast %10 : vector<1x128xf32> to vector<6x128xf32>
    %12 = arith.subf %5, %11 : vector<6x128xf32>
    %13 = vector.broadcast %9 : vector<1x128xf32> to vector<6x128xf32>
    %14 = arith.mulf %6, %13 : vector<6x128xf32>
    %cst_4 = arith.constant 1.000000e+00 : f32
    %15 = vector.broadcast %cst_4 : f32 to vector<6x128xf32>
    %16 = arith.subf %15, %14 : vector<6x128xf32>
    %cst_5 = arith.constant 0.000000e+00 : f32
    %17 = vector.broadcast %cst_5 : f32 to vector<6x128xf32>
    %18 = arith.maximumf %16, %17 : vector<6x128xf32>
    %19 = math.sqrt %18 : vector<6x128xf32>
    %cst_6 = arith.constant 0.000000e+00 : f32
    %20 = vector.broadcast %cst_6 : f32 to vector<6x128xf32>
    %21 = arith.subf %20, %19 : vector<6x128xf32>
    %22 = arith.mulf %21, %12 : vector<6x128xf32>
    %cst_7 = arith.constant dense<0.000000e+00> : vector<128xf32>
    %23 = vector.multi_reduction <add>, %22, %cst_7 [0] : vector<6x128xf32> to vector<128xf32>
    %24 = vector.shape_cast %23 : vector<128xf32> to vector<1x128xf32>
    %25 = tpu.reciprocal %24 : vector<1x128xf32> -> vector<1x128xf32>
    %cst_8 = arith.constant 1.000000e+00 : f32
    %26 = vector.broadcast %cst_8 : f32 to vector<1x128xf32>
    %27 = arith.mulf %26, %25 : vector<1x128xf32>
    %28 = tpu.iota {dimensions = array<i32: 0>} : vector<6x128xi32>
    %29 = vector.broadcast %1 : vector<1x128xi32> to vector<6x128xi32>
    %30 = arith.cmpi eq, %28, %29 : vector<6x128xi32>
    %31 = vector.broadcast %27 : vector<1x128xf32> to vector<6x128xf32>
    %32 = arith.mulf %22, %31 : vector<6x128xf32>
    %cst_9 = arith.constant 0.000000e+00 : f32
    %33 = vector.broadcast %cst_9 : f32 to vector<6x128xf32>
    %34 = arith.select %30, %32, %33 : vector<6x128xi1>, vector<6x128xf32>
    %c1_i32 = arith.constant 1 : i32
    %35 = arith.cmpi eq, %arg0, %c1_i32 : i32
    %true = arith.constant true
    %36 = arith.xori %35, %true : i1
    %37 = arith.extui %36 : i1 to i32
    %c0_i32 = arith.constant 0 : i32
    %38 = arith.cmpi ne, %37, %c0_i32 : i32
    scf.if %38 {
      %cst_11 = arith.constant dense<0.000000e+00> : vector<6xf32>
      %41 = vector.multi_reduction <add>, %34, %cst_11 [1] : vector<6x128xf32> to vector<6xf32>
      %42 = vector.shape_cast %41 : vector<6xf32> to vector<6x1xf32>
      %cst_12 = arith.constant dense<0.000000e+00> : vector<1xf32>
      %43 = vector.multi_reduction <add>, %42, %cst_12 [0] : vector<6x1xf32> to vector<1xf32>
      %44 = vector.shape_cast %43 : vector<1xf32> to vector<1x1xf32>
      %45 = vector.shape_cast %44 : vector<1x1xf32> to vector<1x1xf32>
      %46 = vector.broadcast %45 : vector<1x1xf32> to vector<1x128xf32>
      %c0_13 = arith.constant 0 : index
      %c0_14 = arith.constant 0 : index
      %47 = vector.load %arg4[%c0_13, %c0_14] : memref<1x128xf32, #tpu.memory_space<vmem>>, vector<1x128xf32>
      tpu.vector_store %arg4[%c0_13, %c0_14], %46 {strides = array<i32>} : memref<1x128xf32, #tpu.memory_space<vmem>>, vector<1x128xf32>,
    } else {
    }
    %39 = arith.extui %35 : i1 to i32
    %c0_i32_10 = arith.constant 0 : i32
    %40 = arith.cmpi ne, %39, %c0_i32_10 : i32
    scf.if %40 {
      %41 = tpu.iota {dimensions = array<i32: 1>} : vector<1x128xi32>
      %c128_i32 = arith.constant 128 : i32
      %42 = arith.muli %arg0, %c128_i32 : i32
      %43 = vector.broadcast %42 : i32 to vector<1x128xi32>
      %44 = arith.addi %41, %43 : vector<1x128xi32>
      %c0_11 = arith.constant 0 : index
      %45 = memref.load %arg1[%c0_11] : memref<1xi32, #tpu.memory_space<smem>>
      %46 = vector.broadcast %45 : i32 to vector<1x128xi32>
      %47 = arith.cmpi slt, %44, %46 : vector<1x128xi32>
      %cst_12 = arith.constant 0.000000e+00 : f32
      %48 = vector.shape_cast %47 : vector<1x128xi1> to vector<1x128xi1>
      %49 = vector.broadcast %48 : vector<1x128xi1> to vector<6x128xi1>
      %50 = vector.broadcast %cst_12 : f32 to vector<6x128xf32>
      %51 = arith.select %49, %34, %50 : vector<6x128xi1>, vector<6x128xf32>
      %cst_13 = arith.constant dense<0.000000e+00> : vector<6xf32>
      %52 = vector.multi_reduction <add>, %51, %cst_13 [1] : vector<6x128xf32> to vector<6xf32>
      %53 = vector.shape_cast %52 : vector<6xf32> to vector<6x1xf32>
      %cst_14 = arith.constant dense<0.000000e+00> : vector<1xf32>
      %54 = vector.multi_reduction <add>, %53, %cst_14 [0] : vector<6x1xf32> to vector<1xf32>
      %55 = vector.shape_cast %54 : vector<1xf32> to vector<1x1xf32>
      %56 = vector.shape_cast %55 : vector<1x1xf32> to vector<1x1xf32>
      %57 = vector.broadcast %56 : vector<1x1xf32> to vector<1x128xf32>
      %c0_15 = arith.constant 0 : index
      %c0_16 = arith.constant 0 : index
      %58 = vector.load %arg4[%c0_15, %c0_16] : memref<1x128xf32, #tpu.memory_space<vmem>>, vector<1x128xf32>
      tpu.vector_store %arg4[%c0_15, %c0_16], %57 {strides = array<i32>} : memref<1x128xf32, #tpu.memory_space<vmem>>, vector<1x128xf32>,
    } else {
    }
    return
  }
  func.func @transform_0(%arg0: i32, %arg1: memref<1xi32, #tpu.memory_space<smem>>) -> (i32, i32) {
    %c0_i32 = arith.constant 0 : i32
    %c0_i32_0 = arith.constant 0 : i32
    return %c0_i32, %arg0 : i32, i32
  }
  func.func @transform_1(%arg0: i32, %arg1: memref<1xi32, #tpu.memory_space<smem>>) -> (i32, i32) {
    %c0_i32 = arith.constant 0 : i32
    %c0_i32_0 = arith.constant 0 : i32
    return %c0_i32, %arg0 : i32, i32
  }
  func.func @transform_2(%arg0: i32, %arg1: memref<1xi32, #tpu.memory_space<smem>>) -> (i32, i32) {
    %c0_i32 = arith.constant 0 : i32
    %c0_i32_0 = arith.constant 0 : i32
    return %c0_i32, %arg0 : i32, i32
  }
}

</mosaic_0001>

<bundles_post_ra>
// kernel: tpu_custom_call.1
= control target key start
LH: loop header
LB: loop body
LE: loop exit
PB: predicated region body
PF: predicated region fallthrough
CT: control target
= control target key end

     0   :  { %s728_s0 = inlined_call_operand.<no memory space> [shape: s32[1], index: 0, kind: input, shape index: {}]   ;;  %s729_s1 = inlined_call_operand.hbm [shape: f32[6,200], index: 1, kind: input, shape index: {}]   ;;  %s730_s2 = inlined_call_operand.vmem [shape: s32[1,200], index: 2, kind: input, shape index: {}]   ;;  %s731_s3 = inlined_call_operand.hbm [shape: f32[1,256], index: 3, kind: output, shape index: {}]  }
   0x1   :  { %8 = sst [smem:[#allocation3]] %s728_s0 }
   0x2   :  { %9 = vsyncpa [#allocation5], 0 }
   0x3   :  { %11 = vsyncpa [#allocation5 + $0x1], 0 }
   0x4   :  { %12 = vsyncpa [#allocation6], 0 }
   0x5   :  { %14 = vsyncpa [#allocation6 + $0x1], 0  ;;  %s549_s14 = smov 0   ;;  %s551_s15 = smov 0  }
   0x6   :  { %s553_s16 = smov 0   ;;  %s555_s17 = smov 0  }
   0x7 LB: > { %s570_s0 = sadd.s32 4294967295, %s522_s17   ;;  %s356_s18 = sadd.s32 4294967294, %s522_s17   ;;  %s522_s17 = sphi %s555_s17, %s748_s17   ;;  %s518_s16 = sphi %s553_s16, %s747_s16   ;;  %s514_s15 = sphi %s551_s15, %s746_s15   ;;  %s510_s14 = sphi %s549_s14, %s745_s14  }
   0x8   : > { %s574_s19 = sadd.s32 1, %s522_s17   ;;  %s27_s20 = sadd.s32 1, %s518_s16 }
   0x9   : > { %s24_s21 = ssub.s32 %s522_s17, %s574_s19  ;;  %p34_p0 = scmp.ne.s32.totalorder %s518_s16, %s514_s15 }
   0xa   : > { %p25_p1 = scmp.eq.s32.totalorder %s24_s21, 0  ;;  %p35_p2 = scmp.eq.s32.totalorder %s522_s17, 0 }
   0xb   : > { %p40_p3 = scmp.ne.s32.totalorder %s514_s15, %s510_s14  ;;  %p41_p4 = scmp.eq.s32.totalorder %s570_s0, 0 }
   0xc   : > { %s586_s22 = scalar_select %p25_p1, %s518_s16, %s27_s20  }
   0xd   : > { %p588_p5 = por %p35_p2, %p34_p0  ;;  %p592_p6 = por %p41_p4, %p40_p3 }
   0xe   : > { %p732_p7 = scmp.eq.s32.totalorder %s570_s0, 1  ;;  %p96_p8 = scmp.eq.s32.totalorder %s356_s18, 1 }
   0xf   : > { %p382_p10 = scmp.lt.s32.totalorder %s522_s17, 2  ;;  %s116_s27 = sand.u32 1, %s518_s16  }
  0x10   : > { %p601_p11 = por %p732_p7, %p34_p0  ;;  %p605_p12 = por %p96_p8, %p40_p3 }
  0x11   : > { %s360_s28 = sshll.u32 %s522_s17, 7  ;;  %s359_s29 = sshll.u32 %s116_s27, 3 }
  0x12   : > { %s736_s25 = scalar_select %p601_p11, 1, 0 }
  0x13   : > { %s737_s26 = scalar_select %p605_p12, 1, 0 }
  0x14   : > { %s614_s5 = scalar_lea.hbm %s729_s1, %s360_s28  ;;  %s120_s6 = scalar_lea.vmem [#allocation4], %s359_s29 }
  0x15   : > { %s127_s7 = sshll.u32 %s120_s6, 4  ;;  %p618_p13 = pnand %p382_p10, %p588_p5  ;;  %s622_s7 = int_to_ptr.vmem [resolvable:$true] %s127_s7 }
  0x16   : > { %s117_s9 = scalar_lea.sflag [#allocation5], %s116_s27  ;;  %s426_s10 = scalar_lea.hbm %s614_s5, 128 }
  0x17   : > { %p427_p2 = scmp.ne.s32.totalorder %s614_s5, %s426_s10  ;;  %p428_p3 = pneg %p618_p13 }
  0x18   : > { %s431_s13 = scalar_lea.hbm %s729_s1, 256  ;;  %p432_p5 = scmp.lt.u32.totalorder %s614_s5, %s729_s1 }
  0x19   : > { %p429_p4 = pnand %p428_p3, %p427_p2  ;;  %p433_p10 = scmp.lt.u32.totalorder %s431_s13, %s426_s10 }
  0x1a   : > { %p435_p7 = scmp.lt.u32.totalorder %s426_s10, %s614_s5 }
  0x1b   : > { %p430_p8 = pneg %p429_p4  ;;  %p434_p9 = por %p433_p10, %p432_p5 }
  0x1d   : > { %p436_p0 = por %p435_p7, %p434_p9 }
  0x1f   : > { %p437_p1 = pnand %p436_p0, %p430_p8 }
  0x21   : > { %440 = shalt.err (!%p437_p1)
}
  0x22   : > { %s441_s21 = scalar_lea.vmem %s622_s7, 128  ;;  %s524_s23 = smov [#allocation4]  }
  0x23   : > { %p442_p2 = scmp.ne.s32.totalorder %s622_s7, %s441_s21  ;;  %s446_s27 = sshll.u32 %s524_s23, 4  ;;  %s447_s27 = int_to_ptr.vmem [resolvable:$false] %s446_s27 }
  0x24   : > { %s448_s28 = scalar_lea.vmem %s447_s27, 256  ;;  %p449_p11 = scmp.lt.s32.totalorder %s622_s7, %s447_s27 }
  0x25   : > { %p444_p4 = pnand %p442_p2, %p428_p3  ;;  %p450_p5 = scmp.lt.s32.totalorder %s448_s28, %s441_s21 }
  0x27   : > { %p445_p12 = pneg %p444_p4  ;;  %p451_p10 = por %p450_p5, %p449_p11 }
  0x29   : > { %p452_p7 = pnand %p451_p10, %p445_p12 }
  0x2b   : > { %455 = shalt.err (!%p452_p7)
}
  0x2c   : > { %377 = dma.hbm_to_vmem [thread:$0]  (!%p618_p13), %s614_s5, 128, %s622_s7, %s117_s9  }
  0x2d   : > { %p739_p9 = scmp.lt.s32.totalorder %s522_s17, 3  ;;  %p740_p0 = scmp.ge.s32.totalorder %s522_s17, 1 }
  0x2f   : > { %p139_p1 = pnand %p740_p0, %p739_p9 }
  0x30   : > { %s656_s29 = sand.u32 (!%p139_p1), 1, %s514_s15  }
  0x31   : > { %142 = sbr.rel (%p139_p1) target bundleno = 511 (0x1ff), region = 28  ;;  %s362_s30 = sshll.u32 (!%p139_p1), %s656_s29, 3 }
  0x32   : > { %s145_s4 = scalar_lea.sflag (!%p139_p1), [#allocation5], %s656_s29  ;;  %s148_s6 = scalar_lea.vmem (!%p139_p1), [#allocation4], %s362_s30 }
  0x38   : > { %501 = dma.done.wait (%p592_p6), %s145_s4, 128  }
  0x39   : > { %503 = vsyncadd (%p592_p6), %s145_s4, 4294967168  ;;  %vm176_vm0 = vcmask 1045504   ;;  %v174_v0 = vld [vmem:[%s148_s6] sm:$0x3f]  ;;  %p171_p6 = scmp.lt.s32.totalorder %s570_s0, 1  ;;  %v218_v39 = vlaneseq  ;;  %s673_s9 = scalar_lea.vmem [#allocation7], %s656_s29 }
  0x3a   : > { %v177_v1 = vsel %vm176_vm0, %v174_v0, -inf  ;;  %p741_p11 = scmp.eq.s32.totalorder %s570_s0, 1 }
  0x3b   : > { %v178_v2 = vrot.slane %v177_v1, 4  ;;  %s172_s24 = scalar_select %p171_p6, %s570_s0, 1  ;;  %v219_v40 = vshrl.u32 %v218_v39, 7 }
  0x3d   : > { %v179_v3 = vmax.f32 %v177_v1, %v178_v2  ;;  %s173_s8 = scalar_lea.vmem %s730_s2, %s172_s24 }
  0x3e   : > { %v363_v41 = vld [vmem:[%s173_s8] ss:$0 sm:$0xff] }
  0x3f   : > { %v180_v4 = vrot.slane %v179_v3, 2  ;;  %vm224_vm3 = vcmp.eq.s32.totalorder %v219_v40, %v363_v41 }
  0x41   : > { %v181_v5 = vmax.f32 %v179_v3, %v180_v4 }
  0x43   : > { %v182_v6 = vrot.slane %v181_v5, 1 }
  0x45   : > { %v183_v7 = vmax.f32 %v181_v5, %v182_v6 }
  0x47   : > { %v184_v8 = vsub.f32 %v174_v0, %v183_v7 }
  0x49   : > { %v185_v9 = vmul.f32 1.442695, %v184_v8 }
  0x4b   : > { %416 = vpow2.f32 %v185_v9 }
  0x55   : > { %v417_v10 = vpop.eup %416 }
  0x56   : > { %v187_v11 = vsel %vm176_vm0, %v417_v10, 0.0 }
  0x57   : > { %v188_v12 = vrot.slane %v187_v11, 4 }
  0x59   : > { %v189_v13 = vadd.f32 %v188_v12, %v187_v11 }
  0x5b   : > { %v190_v14 = vrot.slane %v189_v13, 2 }
  0x5d   : > { %v191_v15 = vadd.f32 %v190_v14, %v189_v13 }
  0x5f   : > { %v192_v16 = vrot.slane %v191_v15, 1 }
  0x61   : > { %v193_v17 = vadd.f32 %v192_v16, %v191_v15 }
  0x63   : > { %418 = vrcp.f32 %v193_v17 }
  0x64   : > { %420 = vlog2.f32 %v193_v17 }
  0x6d   : > { %v419_v18 = vpop.eup %418 }
  0x6e   : > { %v198_v19 = vmul.f32 %v419_v18, %v417_v10  ;;  %v421_v22 = vpop.eup %420 }
  0x6f   : > { %v196_v23 = vmul.f32 0.6931472, %v421_v22 }
  0x70   : > { %v199_v20 = vsub.f32 1.0, %v198_v19 }
  0x71   : > { %v197_v27 = vsub.f32 %v184_v8, %v196_v23 }
  0x72   : > { %v200_v21 = vmax.f32 %v199_v20, 0.0 }
  0x74   : > { %422 = vrsqrt.f32 %v200_v21  ;;  %vm203_vm1 = vcmp.eq.f32.partialorder %v200_v21, inf  ;;  %v206_v25 = vand.u32 2147483648, %v200_v21  ;;  %vm205_vm2 = vcmp.eq.f32.partialorder %v200_v21, 0.0 }
  0x7e   : > { %v423_v24 = vpop.eup %422 }
  0x7f   : > { %v202_v26 = vmul.f32 %v423_v24, %v200_v21 }
  0x81   : > { %v204_v28 = vsel %vm203_vm1, %v200_v21, %v202_v26 }
  0x82   : > { %v207_v29 = vsel %vm205_vm2, %v206_v25, %v204_v28 }
  0x83   : > { %v208_v30 = vsub.f32 0.0, %v207_v29 }
  0x85   : > { %v209_v31 = vmul.f32 %v208_v30, %v197_v27 }
  0x87   : > { %v210_v32 = vsel %vm176_vm0, %v209_v31, 0.0 }
  0x88   : > { %v211_v33 = vrot.slane %v210_v32, 4 }
  0x8a   : > { %v212_v34 = vadd.f32 %v211_v33, %v210_v32 }
  0x8c   : > { %v213_v35 = vrot.slane %v212_v34, 2 }
  0x8e   : > { %v214_v36 = vadd.f32 %v213_v35, %v212_v34 }
  0x90   : > { %v215_v37 = vrot.slane %v214_v36, 1 }
  0x92   : > { %v216_v38 = vadd.f32 %v215_v37, %v214_v36 }
  0x94   : > { %424 = vrcp.f32 %v216_v38 }
  0x9b   : > { %231 = sbr.rel (%p741_p11) target bundleno = 319 (0x13f), region = 36 }
  0x9e   : > { %v425_v42 = vpop.eup %424 }
  0x9f   : > { %v225_v43 = vmul.f32 %v425_v42, %v209_v31 }
  0xa1   : > { %v226_v44 = vsel %vm224_vm3, %v225_v43, 0.0 }
  0xa2   : > { %v232_v45 = vsel %vm176_vm0, %v226_v44, 0.0 }
  0xa3   : > { %233 = vadd.xlane.f32.xlu0 %v232_v45 }
 0x130   : > { %v234_v46 = vpop.xlane.xlu0 %233 }
 0x131   : > { %v235_v47 = vsel %vm176_vm0, %v234_v46, 0.0 }
 0x132   : > { %v236_v48 = vrot.slane %v235_v47, 4 }
 0x134   : > { %v237_v49 = vadd.f32 %v236_v48, %v235_v47 }
 0x136   : > { %v238_v50 = vrot.slane %v237_v49, 2 }
 0x138   : > { %v239_v51 = vadd.f32 %v238_v50, %v237_v49 }
 0x13a   : > { %v240_v52 = vrot.slane %v239_v51, 1 }
 0x13c   : > { %v241_v53 = vadd.f32 %v240_v52, %v239_v51 }
 0x13e   : > { %242 = vst [vmem:[%s673_s9] sm:$0x1] %v241_v53 }
 0x13f PF: > { %p365_p12 = scmp.ne.s32.totalorder %s570_s0, 1 }
 0x140   : > { %v247_v54 = vand.u32 (!%p365_p12), 127, %v218_v39  ;;  %s366_s10 = sshll.u32 (!%p365_p12), %s570_s0, 7  ;;  %s251_s11 = sld [smem:[#allocation3]] (!%p365_p12) }
 0x141   : > { %245 = sbr.rel (%p365_p12) target bundleno = 486 (0x1e6), region = 40  ;;  %v249_v55 = vstv (!%p365_p12), %s366_s10 }
 0x142   : > { %v250_v56 = vadd.s32 (!%p365_p12), %v249_v55, %v247_v54 }
 0x146   : > { %v252_v57 = vstv (!%p365_p12), %s251_s11 }
 0x147   : > { %vm253_vm4 = vcmp.lt.s32.totalorder (!%p365_p12), %v250_v56, %v252_v57 }
 0x148   : > { %v256_v58 = vsel %vm253_vm4, %v226_v44, 0.0 }
 0x149   : > { %v257_v59 = vsel %vm176_vm0, %v256_v58, 0.0 }
 0x14a   : > { %258 = vadd.xlane.f32.xlu0 %v257_v59 }
 0x1d7   : > { %v259_v60 = vpop.xlane.xlu0 %258 }
 0x1d8   : > { %v260_v61 = vsel %vm176_vm0, %v259_v60, 0.0 }
 0x1d9   : > { %v261_v62 = vrot.slane %v260_v61, 4 }
 0x1db   : > { %v262_v63 = vadd.f32 %v261_v62, %v260_v61 }
 0x1dd   : > { %v263_v0 = vrot.slane %v262_v63, 2 }
 0x1df   : > { %v264_v1 = vadd.f32 %v263_v0, %v262_v63 }
 0x1e1   : > { %v265_v2 = vrot.slane %v264_v1, 1 }
 0x1e3   : > { %v266_v3 = vadd.f32 %v265_v2, %v264_v1 }
 0x1e5   : > { %267 = vst [vmem:[%s673_s9] sm:$0x1] %v266_v3 }
 0x1e6 PF: > { %s367_s12 = sshll.u32 %s570_s0, 4  ;;  %s281_s21 = sshll.u32 %s673_s9, 4  ;;  %s282_s21 = int_to_ptr.vmem [resolvable:$true] %s281_s21 }
 0x1e7   : > { %s689_s20 = scalar_lea.hbm %s731_s3, %s367_s12  ;;  %s269_s23 = scalar_lea.sflag [#allocation6], %s656_s29 }
 0x1e8   : > { %s456_s27 = scalar_lea.vmem %s282_s21, 16  ;;  %p742_p3 = scmp.ne.s32.totalorder %s736_s25, 0 }
 0x1e9   : > { %p457_p13 = scmp.ne.s32.totalorder %s282_s21, %s456_s27  ;;  %s525_s28 = smov [#allocation7]  }
 0x1ea   : > { %s460_s30 = sshll.u32 %s525_s28, 4  ;;  %s461_s30 = int_to_ptr.vmem [resolvable:$false] %s460_s30 }
 0x1eb   : > { %p458_p8 = pnand %p457_p13, %p742_p3  ;;  %s462_s4 = scalar_lea.vmem %s461_s30, 32 }
 0x1ec   : > { %p463_p4 = scmp.lt.s32.totalorder %s282_s21, %s461_s30  ;;  %p464_p5 = scmp.lt.s32.totalorder %s462_s4, %s456_s27 }
 0x1ed   : > { %p459_p2 = pneg %p458_p8 }
 0x1ee   : > { %p465_p10 = por %p464_p5, %p463_p4 }
 0x1f0   : > { %p466_p7 = pnand %p465_p10, %p459_p2 }
 0x1f2   : > { %469 = shalt.err (!%p466_p7)
}
 0x1f3   : > { %s470_s0 = scalar_lea.hbm %s689_s20, 16  ;;  %s474_s24 = scalar_lea.hbm %s731_s3, 32 }
 0x1f4   : > { %p471_p9 = scmp.ne.s32.totalorder %s689_s20, %s470_s0  ;;  %p475_p6 = scmp.lt.u32.totalorder %s689_s20, %s731_s3 }
 0x1f5   : > { %p476_p11 = scmp.lt.u32.totalorder %s474_s24, %s470_s0  ;;  %p478_p13 = scmp.lt.u32.totalorder %s470_s0, %s689_s20 }
 0x1f6   : > { %p472_p0 = pnand %p471_p9, %p742_p3 }
 0x1f7   : > { %p477_p12 = por %p476_p11, %p475_p6 }
 0x1f8   : > { %p473_p1 = pneg %p472_p0 }
 0x1f9   : > { %p479_p8 = por %p478_p13, %p477_p12 }
 0x1fb   : > { %p480_p2 = pnand %p479_p8, %p473_p1 }
 0x1fd   : > { %483 = shalt.err (!%p480_p2)
}
 0x1fe   : > { %372 = dma.vmem_to_hbm [thread:$0]  (%p742_p3), %s282_s21, 16, %s689_s20, %s269_s23  }
 0x1ff PF: > { %s293_s8 = sand.u32 1, %s510_s14   ;;  %p743_p4 = scmp.ne.s32.totalorder %s737_s26, 0 }
 0x200   : > { %p744_p5 = scmp.ge.s32.totalorder %s522_s17, 2  ;;  %s294_s9 = scalar_lea.sflag [#allocation6], %s293_s8 }
 0x202   : > { %p379_p10 = pnand %p744_p5, %p743_p4 }
 0x204   : > { %505 = dma.done.wait (!%p379_p10), %s294_s9, 16  }
 0x205   : > { %507 = vsyncadd (!%p379_p10), %s294_s9, 4294967280  ;;  %p17_p7 = scmp.ge.s32.totalorder %s574_s19, 4   ;;  %s745_s14 = smov %s514_s15 }
 0x206   : > { %s746_s15 = smov %s518_s16  ;;  %s747_s16 = smov %s586_s22 }
 0x207   : > { %s748_s17 = smov %s574_s19  ;;  %19 = sbr.rel (!%p17_p7) target bundleno = 7 (0x7), region = 84 }
 0x20e   :  { %298 = vsyncpa [#allocation5], 1 }
 0x20f   :  { %300 = vsyncpa [#allocation5 + $0x1], 1 }
 0x210   :  { %301 = vsyncpa [#allocation6], 1 }
 0x211   :  { %303 = vsyncpa [#allocation6 + $0x1], 1 }

</bundles_post_ra>
